<compile_context>
chip_gen: v5e
topology: v5e:2x2
jax: 0.10.0
libtpu: 0.0.40
codegen_flags: <defaults>
</compile_context>

<pallas_src>
import functools

import numpy as np

import jax
import jax.numpy as jnp
from jax.experimental import pallas as pl
from jax.experimental.pallas import tpu as pltpu


_PALLAS_BN_RELU_MIN_ELEMS = 1 << 20   # below this, let XLA fuse the BN/ReLU epilogue


def _conv_stats_kernel(x_ref, w_ref, conv_ref, ssum_ref, ssq_ref, *, KH, Hout):
    """Per-image conv as KH block-Toeplitz MXU matmuls + lane-collapsed partial stats.

    x_ref:    (1, Hpad, W*Cin)   bf16, H-halo-padded, lane-collapsed input
    w_ref:    (KH, W*Cin, Wout*Cout) bf16 block-Toeplitz weights (W halo folded in)
    conv_ref: (1, Hout, Wout*Cout)   bf16 conv output (bias omitted: it cancels
                                     exactly under training-mode BN)
    ssum_ref: (1, 1, Wout*Cout)  f32 per-image column sums of the f32 accumulator
    ssq_ref:  (1, 1, Wout*Cout)  f32 per-image column sums of squares
    """
    xp = x_ref[0]                                     # (Hpad, W*Cin), bf16, whole block

    # KH shifted matmuls accumulated in f32 — no im2col, no in-kernel relayout of the
    # lane axis; the kh shift is just a sublane-offset slice of the input block.
    acc = None
    for kh in range(KH):
        part = jax.lax.dot_general(
            xp[kh:kh + Hout, :], w_ref[kh],
            (((1,), (0,)), ((), ())),
            preferred_element_type=jnp.float32)       # (Hout, Wout*Cout) f32
        acc = part if acc is None else acc + part

    # Lane-dense bf16 store of the intermediate (halves the HBM round trip to pass 2).
    conv_ref[0] = acc.astype(conv_ref.dtype)

    # Per-image partial BN statistics, kept lane-collapsed.  Only a tiny Hout-row
    # sublane reduce here; the per-channel fold over (N, Wout) is done on the tiny
    # stats arrays in the wrapper (no sublane<->lane repack in-kernel).
    ssum_ref[0] = jnp.sum(acc, axis=0, keepdims=True)           # (1, Wout*Cout)
    ssq_ref[0] = jnp.sum(acc * acc, axis=0, keepdims=True)      # (1, Wout*Cout)


def _bn_relu_kernel(conv_ref, scale_ref, shift_ref, o_ref):
    """y = relu(conv * scale + shift) on lane-dense row slabs."""
    y = conv_ref[...].astype(jnp.float32) * scale_ref[...] + shift_ref[...]
    o_ref[...] = jnp.maximum(y, 0.0).astype(o_ref.dtype)


def _block_toeplitz_weights(w_oihw, W, Wout, padding, compute_dtype):
    """(Cout, Cin, KH, KW) -> (KH, W*Cin, Wout*Cout) block-Toeplitz matrices.

    w_toep[kh, w_in*Cin + cin, w_out*Cout + cout] = w[cout, cin, kh, kw] where
    w_in = w_out + kw - padding; out-of-range taps are omitted, i.e. the W-direction
    zero padding is folded into the weights (no lane-axis pad of the activation).
    """
    Cout, Cin, KH, KW = w_oihw.shape
    sel = np.zeros((KW, W, Wout), np.float32)          # static host-side constant
    for kw in range(KW):
        for wo in range(Wout):
            wi = wo + kw - padding
            if 0 <= wi < W:
                sel[kw, wi, wo] = 1.0
    w_hw = jnp.transpose(w_oihw, (2, 3, 1, 0)).astype(jnp.float32)   # (KH,KW,Cin,Cout)
    w_toep = jnp.einsum("hkio,kwv->hwivo", w_hw, jnp.asarray(sel))   # (KH,W,Cin,Wout,Cout)
    return w_toep.reshape(KH, W * Cin, Wout * Cout).astype(compute_dtype)


def conv_once_forward(x_nchw, w_oihw, bias, gamma, beta, *, stride=1, padding=1,
                      eps=1e-5, compute_dtype=jnp.bfloat16, bn_relu_pallas=None):
    """Equivalent of convOnce.forward(x) for stride=1 convs. Input/output are NCHW."""
    assert stride == 1, "this kernel implements the module's default stride=1"
    N, Cin, H, W = x_nchw.shape
    Cout, Cin_w, KH, KW = w_oihw.shape
    assert Cin == Cin_w
    Hout = H + 2 * padding - KH + 1
    Wout = W + 2 * padding - KW + 1
    Hpad = H + 2 * padding
    L = Wout * Cout
    itemsize = jnp.dtype(compute_dtype).itemsize

    # --- wrapper glue: NCHW -> lane-collapsed (N, Hpad, W*Cin), bf16 MXU operands ---
    # Only the 2-row H halo is padded here and XLA fuses it into the same fusion as
    # the transpose/cast (single HBM round trip); the W halo lives in the weights.
    x_coll = (jnp.transpose(x_nchw, (0, 2, 3, 1))
              .reshape(N, H, W * Cin).astype(compute_dtype))
    x_coll = jnp.pad(x_coll, ((0, 0), (padding, padding), (0, 0)))

    w_toep = _block_toeplitz_weights(w_oihw, W, Wout, padding, compute_dtype)

    # ---------------- pass 1: conv + per-image lane-collapsed sum / sumsq ----------
    cost1 = pl.CostEstimate(
        flops=2 * N * KH * Hout * (W * Cin) * L + 4 * N * Hout * L,
        transcendentals=0,
        bytes_accessed=(x_coll.size * itemsize + N * w_toep.size * itemsize
                        + N * Hout * L * itemsize + 2 * N * L * 4))

    conv_out, ssum_p, ssq_p = pl.pallas_call(
        functools.partial(_conv_stats_kernel, KH=KH, Hout=Hout),
        grid=(N,),
        in_specs=[
            pl.BlockSpec((1, Hpad, W * Cin), lambda n: (n, 0, 0)),
            pl.BlockSpec((KH, W * Cin, L), lambda n: (0, 0, 0)),
        ],
        out_specs=(
            pl.BlockSpec((1, Hout, L), lambda n: (n, 0, 0)),
            pl.BlockSpec((1, 1, L), lambda n: (n, 0, 0)),
            pl.BlockSpec((1, 1, L), lambda n: (n, 0, 0)),
        ),
        out_shape=(
            jax.ShapeDtypeStruct((N, Hout, L), compute_dtype),    # bf16 intermediate
            jax.ShapeDtypeStruct((N, 1, L), jnp.float32),         # f32 partial sum
            jax.ShapeDtypeStruct((N, 1, L), jnp.float32),         # f32 partial sumsq
        ),
        compiler_params=pltpu.CompilerParams(
            dimension_semantics=("parallel",),
            # Per-step VMEM is only ~100 KiB here; 32 MiB keeps headroom even on
            # v7x's 64 MiB-per-TC budget.
            vmem_limit_bytes=32 * 1024 * 1024),
        cost_estimate=cost1,
    )(x_coll, w_toep)

    # ----- tiny per-channel glue: fold batch stats + BN affine into scale/shift -----
    count = N * Hout * Wout
    ssum = jnp.sum(ssum_p.reshape(N, Wout, Cout), axis=(0, 1))    # (Cout,)
    ssq = jnp.sum(ssq_p.reshape(N, Wout, Cout), axis=(0, 1))
    mean = ssum / count
    # NOTE: E[x^2]-E[x]^2 in f32; fine at these counts.  Consider centered
    # accumulation if very large N*H*W with |mean| >> std shows drift.
    var = jnp.maximum(ssq / count - mean * mean, 0.0)             # biased variance
    # The conv bias is intentionally never applied: with *training-mode* BatchNorm the
    # batch-mean subtraction cancels a per-channel constant exactly.  If this path is
    # ever reused with eval-mode (running-stats) BN, the bias must be re-applied.
    # PyTorch's running_mean/running_var buffer updates are also not emitted here.
    del bias
    scale = gamma.astype(jnp.float32) * jax.lax.rsqrt(var + eps)
    shift = beta.astype(jnp.float32) - mean * scale
    scale_row = jnp.tile(scale, Wout).reshape(1, L)               # lane-collapsed
    shift_row = jnp.tile(shift, Wout).reshape(1, L)

    # ---------------- pass 2: y = relu(conv * scale + shift) ------------------------
    rows = N * Hout
    conv_flat = conv_out.reshape(rows, L)                         # layout-preserving
    if bn_relu_pallas is None:
        bn_relu_pallas = rows * L >= _PALLAS_BN_RELU_MIN_ELEMS

    if bn_relu_pallas:
        # HBM-bound elementwise pass: big lane-dense row slabs amortize per-step
        # overhead; cap the block at a few MiB so it also fits v7x's 64 MiB VMEM.
        out_itemsize = jnp.dtype(x_nchw.dtype).itemsize
        bytes_per_row = L * (itemsize + out_itemsize + 4)
        tr_cap = max(8, ((4 * 1024 * 1024) // max(bytes_per_row, 1)) // 8 * 8)
        TR = min(rows, 512, tr_cap)
        if rows >= 8:
            TR = max(8, (TR // 8) * 8)
        cost2 = pl.CostEstimate(
            flops=3 * rows * L, transcendentals=0,
            bytes_accessed=rows * L * (itemsize + out_itemsize) + 2 * L * 4)
        out_flat = pl.pallas_call(
            _bn_relu_kernel,
            grid=(pl.cdiv(rows, TR),),
            in_specs=[
                pl.BlockSpec((TR, L), lambda r: (r, 0)),
                pl.BlockSpec((1, L), lambda r: (0, 0)),
                pl.BlockSpec((1, L), lambda r: (0, 0)),
            ],
            out_specs=pl.BlockSpec((TR, L), lambda r: (r, 0)),
            out_shape=jax.ShapeDtypeStruct((rows, L), x_nchw.dtype),
            compiler_params=pltpu.CompilerParams(
                dimension_semantics=("parallel",),
                vmem_limit_bytes=32 * 1024 * 1024),
            cost_estimate=cost2,
        )(conv_flat, scale_row, shift_row)
    else:
        # Small activations: a second kernel launch costs more than it saves — let
        # XLA fuse the elementwise epilogue (per review).
        y = conv_flat.astype(jnp.float32) * scale_row + shift_row
        out_flat = jnp.maximum(y, 0.0).astype(x_nchw.dtype)

    out_nhwc = out_flat.reshape(N, Hout, Wout, Cout)
    return jnp.transpose(out_nhwc, (0, 3, 1, 2))                  # back to NCHW


def _reference_forward(x, w, b, gamma, beta, eps=1e-5):
    """Pure-JAX reference (matches PyTorch Conv2d + BatchNorm2d(train) + ReLU)."""
    y = jax.lax.conv_general_dilated(
        x, w, window_strides=(1, 1), padding=((1, 1), (1, 1)),
        dimension_numbers=("NCHW", "OIHW", "NCHW"),
    ) + b.reshape(1, -1, 1, 1)
    mean = jnp.mean(y, axis=(0, 2, 3), keepdims=True)
    var = jnp.mean(jnp.square(y - mean), axis=(0, 2, 3), keepdims=True)
    y = (y - mean) * jax.lax.rsqrt(var + eps)
    y = y * gamma.reshape(1, -1, 1, 1) + beta.reshape(1, -1, 1, 1)
    return jnp.maximum(y, 0.0)


if __name__ == "__main__":
    # Small shapes consistent with the module: batch=2, input_c=4, output_c=8, 16x16.
    N, Cin, Cout, H, W, K = 2, 4, 8, 16, 16, 3

    key = jax.random.PRNGKey(0)
    kx, kw, kb = jax.random.split(key, 3)

    x = jax.random.normal(kx, (N, Cin, H, W), dtype=jnp.float32)

    # Deterministic parameter init (mimics Conv2d's uniform fan-in scaling).
    fan_in = Cin * K * K
    bound = 1.0 / (fan_in ** 0.5)
    w = jax.random.uniform(kw, (Cout, Cin, K, K), jnp.float32, -bound, bound)
    b = jax.random.uniform(kb, (Cout,), jnp.float32, -bound, bound)
    gamma = jnp.ones((Cout,), jnp.float32)    # BatchNorm2d default init
    beta = jnp.zeros((Cout,), jnp.float32)

    ref = jax.block_until_ready(_reference_forward(x, w, b, gamma, beta))

    # Default path at this size: Pallas conv+stats, XLA-fused BN/ReLU epilogue.
    out = jax.block_until_ready(conv_once_forward(x, w, b, gamma, beta))
    assert out.shape == (N, Cout, H, W)
    # bf16 MXU operands + bf16 intermediate -> relaxed tolerance vs the f32 reference.
    assert jnp.allclose(out, ref, atol=5e-2, rtol=5e-2), "mismatch (auto path)"

    # Also exercise the Pallas BN/ReLU epilogue used for large activations.
    out2 = jax.block_until_ready(
        conv_once_forward(x, w, b, gamma, beta, bn_relu_pallas=True))
    assert out2.shape == (N, Cout, H, W)
    assert jnp.allclose(out2, ref, atol=5e-2, rtol=5e-2), "mismatch (pallas epilogue)"

    print("KERNEL_OK")
</pallas_src>

<mosaic_0001>
module attributes {stable_mosaic.version = 11 : i64} {
  func.func @_conv_stats_kernel(%arg0: i32, %arg1: memref<1x18x64xbf16, #tpu.memory_space<vmem>>, %arg2: memref<3x64x128xbf16, #tpu.memory_space<vmem>>, %arg3: memref<1x16x128xbf16, #tpu.memory_space<vmem>>, %arg4: memref<1x1x128xf32, #tpu.memory_space<vmem>>, %arg5: memref<1x1x128xf32, #tpu.memory_space<vmem>>) attributes {dimension_semantics = [#tpu.dimension_semantics<parallel>], iteration_bounds = array<i64: 2>, scalar_prefetch = 0 : i64, scratch_operands = 0 : i64, tpu.core_type = #tpu.core_type<tc>, window_params = [{transform_indices = @transform_0, window_bounds = array<i64: 1, 18, 64>}, {pipeline_mode = #tpu.pipeline_mode<synchronous>, transform_indices = @transform_1, window_bounds = array<i64: 3, 64, 128>}, {transform_indices = @transform_2, window_bounds = array<i64: 1, 16, 128>}, {transform_indices = @transform_3, window_bounds = array<i64: 1, 1, 128>}, {transform_indices = @transform_4, window_bounds = array<i64: 1, 1, 128>}]} {
    %c0 = arith.constant 0 : index
    %c0_0 = arith.constant 0 : index
    %c0_1 = arith.constant 0 : index
    %0 = vector.load %arg1[%c0, %c0_0, %c0_1] : memref<1x18x64xbf16, #tpu.memory_space<vmem>>, vector<1x18x64xbf16>
    %1 = vector.shape_cast %0 : vector<1x18x64xbf16> to vector<18x64xbf16>
    %2 = vector.extract_strided_slice %1 {offsets = [0, 0], sizes = [16, 64], strides = [1, 1]} : vector<18x64xbf16> to vector<16x64xbf16>
    %c0_2 = arith.constant 0 : index
    %c0_3 = arith.constant 0 : index
    %c0_4 = arith.constant 0 : index
    %3 = vector.load %arg2[%c0_2, %c0_3, %c0_4] : memref<3x64x128xbf16, #tpu.memory_space<vmem>>, vector<1x64x128xbf16>
    %4 = vector.shape_cast %3 : vector<1x64x128xbf16> to vector<64x128xbf16>
    %cst = arith.constant dense<0.000000e+00> : vector<16x128xf32>
    %5 = tpu.matmul %2, %4, %cst {dimension_numbers = #tpu.dot_dimension_numbers<[1], [0], [0], [1], [0, 0, 1, 1], [], []>} : vector<16x64xbf16>, vector<64x128xbf16>, vector<16x128xf32> -> vector<16x128xf32>
    %6 = vector.extract_strided_slice %1 {offsets = [1, 0], sizes = [16, 64], strides = [1, 1]} : vector<18x64xbf16> to vector<16x64xbf16>
    %c1 = arith.constant 1 : index
    %c0_5 = arith.constant 0 : index
    %c0_6 = arith.constant 0 : index
    %7 = vector.load %arg2[%c1, %c0_5, %c0_6] : memref<3x64x128xbf16, #tpu.memory_space<vmem>>, vector<1x64x128xbf16>
    %8 = vector.shape_cast %7 : vector<1x64x128xbf16> to vector<64x128xbf16>
    %cst_7 = arith.constant dense<0.000000e+00> : vector<16x128xf32>
    %9 = tpu.matmul %6, %8, %cst_7 {dimension_numbers = #tpu.dot_dimension_numbers<[1], [0], [0], [1], [0, 0, 1, 1], [], []>} : vector<16x64xbf16>, vector<64x128xbf16>, vector<16x128xf32> -> vector<16x128xf32>
    %10 = arith.addf %5, %9 : vector<16x128xf32>
    %11 = vector.extract_strided_slice %1 {offsets = [2, 0], sizes = [16, 64], strides = [1, 1]} : vector<18x64xbf16> to vector<16x64xbf16>
    %c2 = arith.constant 2 : index
    %c0_8 = arith.constant 0 : index
    %c0_9 = arith.constant 0 : index
    %12 = vector.load %arg2[%c2, %c0_8, %c0_9] : memref<3x64x128xbf16, #tpu.memory_space<vmem>>, vector<1x64x128xbf16>
    %13 = vector.shape_cast %12 : vector<1x64x128xbf16> to vector<64x128xbf16>
    %cst_10 = arith.constant dense<0.000000e+00> : vector<16x128xf32>
    %14 = tpu.matmul %11, %13, %cst_10 {dimension_numbers = #tpu.dot_dimension_numbers<[1], [0], [0], [1], [0, 0, 1, 1], [], []>} : vector<16x64xbf16>, vector<64x128xbf16>, vector<16x128xf32> -> vector<16x128xf32>
    %15 = arith.addf %10, %14 : vector<16x128xf32>
    %16 = arith.truncf %15 : vector<16x128xf32> to vector<16x128xbf16>
    %c0_11 = arith.constant 0 : index
    %c0_12 = arith.constant 0 : index
    %c0_13 = arith.constant 0 : index
    %17 = vector.load %arg3[%c0_11, %c0_12, %c0_13] : memref<1x16x128xbf16, #tpu.memory_space<vmem>>, vector<1x16x128xbf16>
    %18 = vector.shape_cast %17 : vector<1x16x128xbf16> to vector<16x128xbf16>
    %19 = vector.shape_cast %16 : vector<16x128xbf16> to vector<1x16x128xbf16>
    tpu.vector_store %arg3[%c0_11, %c0_12, %c0_13], %19 {strides = array<i32>} : memref<1x16x128xbf16, #tpu.memory_space<vmem>>, vector<1x16x128xbf16>,
    %cst_14 = arith.constant dense<0.000000e+00> : vector<128xf32>
    %20 = vector.multi_reduction <add>, %15, %cst_14 [0] : vector<16x128xf32> to vector<128xf32>
    %21 = vector.shape_cast %20 : vector<128xf32> to vector<1x128xf32>
    %c0_15 = arith.constant 0 : index
    %c0_16 = arith.constant 0 : index
    %c0_17 = arith.constant 0 : index
    %22 = vector.load %arg4[%c0_15, %c0_16, %c0_17] : memref<1x1x128xf32, #tpu.memory_space<vmem>>, vector<1x1x128xf32>
    %23 = vector.shape_cast %22 : vector<1x1x128xf32> to vector<1x128xf32>
    %24 = vector.shape_cast %21 : vector<1x128xf32> to vector<1x1x128xf32>
    tpu.vector_store %arg4[%c0_15, %c0_16, %c0_17], %24 {strides = array<i32>} : memref<1x1x128xf32, #tpu.memory_space<vmem>>, vector<1x1x128xf32>,
    %25 = arith.mulf %15, %15 : vector<16x128xf32>
    %cst_18 = arith.constant dense<0.000000e+00> : vector<128xf32>
    %26 = vector.multi_reduction <add>, %25, %cst_18 [0] : vector<16x128xf32> to vector<128xf32>
    %27 = vector.shape_cast %26 : vector<128xf32> to vector<1x128xf32>
    %c0_19 = arith.constant 0 : index
    %c0_20 = arith.constant 0 : index
    %c0_21 = arith.constant 0 : index
    %28 = vector.load %arg5[%c0_19, %c0_20, %c0_21] : memref<1x1x128xf32, #tpu.memory_space<vmem>>, vector<1x1x128xf32>
    %29 = vector.shape_cast %28 : vector<1x1x128xf32> to vector<1x128xf32>
    %30 = vector.shape_cast %27 : vector<1x128xf32> to vector<1x1x128xf32>
    tpu.vector_store %arg5[%c0_19, %c0_20, %c0_21], %30 {strides = array<i32>} : memref<1x1x128xf32, #tpu.memory_space<vmem>>, vector<1x1x128xf32>,
    return
  }
  func.func @transform_0(%arg0: i32) -> (i32, i32, i32) {
    %c0_i32 = arith.constant 0 : i32
    %c0_i32_0 = arith.constant 0 : i32
    %c0_i32_1 = arith.constant 0 : i32
    return %arg0, %c0_i32, %c0_i32_0 : i32, i32, i32
  }
  func.func @transform_1(%arg0: i32) -> (i32, i32, i32) {
    %c0_i32 = arith.constant 0 : i32
    %c0_i32_0 = arith.constant 0 : i32
    %c0_i32_1 = arith.constant 0 : i32
    %c0_i32_2 = arith.constant 0 : i32
    return %c0_i32, %c0_i32_0, %c0_i32_1 : i32, i32, i32
  }
  func.func @transform_2(%arg0: i32) -> (i32, i32, i32) {
    %c0_i32 = arith.constant 0 : i32
    %c0_i32_0 = arith.constant 0 : i32
    %c0_i32_1 = arith.constant 0 : i32
    return %arg0, %c0_i32, %c0_i32_0 : i32, i32, i32
  }
  func.func @transform_3(%arg0: i32) -> (i32, i32, i32) {
    %c0_i32 = arith.constant 0 : i32
    %c0_i32_0 = arith.constant 0 : i32
    %c0_i32_1 = arith.constant 0 : i32
    return %arg0, %c0_i32, %c0_i32_0 : i32, i32, i32
  }
  func.func @transform_4(%arg0: i32) -> (i32, i32, i32) {
    %c0_i32 = arith.constant 0 : i32
    %c0_i32_0 = arith.constant 0 : i32
    %c0_i32_1 = arith.constant 0 : i32
    return %arg0, %c0_i32, %c0_i32_0 : i32, i32, i32
  }
}

</mosaic_0001>

<bundles_post_ra>
// kernel: tpu_custom_call.1
= control target key start
LH: loop header
LB: loop body
LE: loop exit
PB: predicated region body
PF: predicated region fallthrough
CT: control target
= control target key end

     0   :  { %10 = vsyncpa [#allocation3], 0  ;;  %s1100_s0 = inlined_call_operand.vmem [shape: bf16[2,18,64], index: 0, kind: input, shape index: {}]   ;;  %s1101_s1 = inlined_call_operand.hbm [shape: bf16[3,64,128], index: 1, kind: input, shape index: {}]   ;;  %s1102_s2 = inlined_call_operand.hbm [shape: bf16[2,16,128], index: 2, kind: output, shape index: {0}]   ;;  %s1103_s3 = inlined_call_operand.hbm [shape: f32[2,1,128], index: 3, kind: output, shape index: {1}]   ;;  %s1104_s4 = inlined_call_operand.hbm [shape: f32[2,1,128], index: 4, kind: output, shape index: {2}]  }
   0x1   :  { %11 = vsyncpa [#allocation4], 0 }
   0x2   :  { %13 = vsyncpa [#allocation4 + $0x1], 0 }
   0x3   :  { %14 = vsyncpa [#allocation7], 0 }
   0x4   :  { %16 = vsyncpa [#allocation7 + $0x1], 0  ;;  %s948_s15 = smov 0   ;;  %s950_s16 = smov 0  }
   0x5   :  { %s952_s17 = smov 0   ;;  %s954_s18 = smov 0  }
   0x6 LB: > { %s969_s19 = sadd.s32 4294967295, %s916_s18   ;;  %s608_s20 = sadd.s32 4294967294, %s916_s18   ;;  %s916_s18 = sphi %s954_s18, %s1110_s18   ;;  %s912_s17 = sphi %s952_s17, %s1109_s17   ;;  %s908_s16 = sphi %s950_s16, %s1108_s16   ;;  %s904_s15 = sphi %s948_s15, %s1107_s15  }
   0x7   : > { %s973_s21 = sadd.s32 1, %s916_s18   ;;  %s76_s22 = sadd.s32 1, %s912_s17 }
   0x8   : > { %s73_s23 = ssub.s32 %s916_s18, %s973_s21  ;;  %p86_p0 = scmp.ne.s32.totalorder %s912_s17, %s908_s16 }
   0x9   : > { %p74_p1 = scmp.eq.s32.totalorder %s73_s23, 0  ;;  %p87_p2 = scmp.eq.s32.totalorder %s969_s19, 1 }
   0xa   : > { %p92_p3 = scmp.ne.s32.totalorder %s908_s16, %s904_s15  ;;  %p93_p4 = scmp.eq.s32.totalorder %s608_s20, 1 }
   0xb   : > { %s986_s24 = scalar_select %p74_p1, %s912_s17, %s76_s22  }
   0xc   : > { %p988_p5 = por %p87_p2, %p86_p0  ;;  %p992_p6 = por %p93_p4, %p92_p3 }
   0xd   : > { %p609_p7 = scmp.ge.s32.totalorder %s916_s18, 1  ;;  %p152_p8 = scmp.lt.s32.totalorder %s916_s18, 3 }
   0xe   : > { %p720_p9 = scmp.eq.s32.totalorder %s969_s19, 0  ;;  %s163_s29 = sshll.u32 %s1101_s1, 4  ;;  %s164_s29 = int_to_ptr.hbm [resolvable:$true] %s163_s29 }
   0xf   : > { %p153_p10 = pnand %p609_p7, %p152_p8  ;;  %s918_s30 = smov [#allocation2]  }
  0x10   : > { %s165_s5 = sshll.u32 %s918_s30, 4  ;;  %s919_s6 = smov 64   ;;  %s166_s5 = int_to_ptr.vmem [resolvable:$true] %s165_s5 }
  0x11   : > { %p706_p11 = pneg %p153_p10  ;;  %s920_s7 = smov 4  }
  0x12   : > { %189 = sbr.rel (%p153_p10) target bundleno = 219 (0xdb), region = 28 }
  0x13   : > { %p707_p12 = pnand %p720_p9, %p706_p11 }
  0x15   : > { %709 = dma.hbm_to_vmem [thread:$0]  (!%p707_p12), %s164_s29, 1536, %s166_s5, [#allocation3], %s919_s6, %s919_s6, %s920_s7  }
  0x17   : > { %891 = dma.done.wait (%p720_p9), [#allocation3], 1536  }
  0x18   : > { %893 = vsyncadd (%p720_p9), [#allocation3], 4294965760  ;;  %p224_p13 = scmp.lt.s32.totalorder %s969_s19, 1  ;;  %v684_v0 = vld [vmem:[#allocation2 + $0x38] sm:$0xff]  ;;  %v683_v3 = vld [vmem:[#allocation2 + $0x30] sm:$0xff]  ;;  %vm362_vm1 = vcmask 1046528  }
  0x19   : > { %v680_v1 = vld [vmem:[#allocation2 + $0x18] sm:$0xff]  ;;  %303 = vmatpush.bf16.msra.mxu0 %v684_v0  ;;  %v679_v4 = vld [vmem:[#allocation2 + $0x10] sm:$0xff]  ;;  %v682_v9 = vld [vmem:[#allocation2 + $0x28] sm:$0xff]  ;;  %vm258_vm0 = vsmask.f32 7424  ;;  %vm295_vm2 = vcmask 523264  }
  0x1a   : > { %s225_s8 = scalar_select %p224_p13, %s969_s19, 1  ;;  %v688_v2 = vld [vmem:[#allocation2 + $0x58] sm:$0xff]  ;;  %343 = vmatpush.bf16.msra.mxu1 %v680_v1  ;;  %v687_v5 = vld [vmem:[#allocation2 + $0x50] sm:$0xff]  ;;  %v678_v10 = vld [vmem:[#allocation2 + $0x8] sm:$0xff] }
  0x1b   : > { %397 = vmatpush.bf16.msra.mxu2 %v688_v2  ;;  %v686_v13 = vld [vmem:[#allocation2 + $0x48] sm:$0xff]  ;;  %v681_v17 = vld [vmem:[#allocation2 + $0x20] sm:$0xff]  ;;  %s1014_s13 = sand.u32 1, %s908_s16   ;;  %s689_s14 = sshll.u32 %s969_s19, 3 }
  0x1c   : > { %s695_s9 = smul.u32 12, %s225_s8  ;;  %v677_v18 = vld [vmem:[#allocation2] sm:$0xff]  ;;  %s614_s22 = sshll.u32 %s1014_s13, 3 }
  0x1d   : > { %304 = vmatpush.bf16.msra.mxu0 %v683_v3  ;;  %v685_v20 = vld [vmem:[#allocation2 + $0x40] sm:$0xff]  ;;  %s451_s28 = scalar_lea.hbm %s1102_s2, %s689_s14  ;;  %s211_s29 = scalar_lea.vmem [#allocation5], %s614_s22 }
  0x1e   : > { %s228_s12 = scalar_lea.vmem %s1100_s0, %s695_s9  ;;  %344 = vmatpush.bf16.msra.mxu1 %v679_v4  ;;  %s452_s30 = sshll.u32 %s211_s29, 4  ;;  %s453_s30 = int_to_ptr.vmem [resolvable:$true] %s452_s30 }
  0x1f   : > { %v676_v6 = vld [vmem:[%s228_s12] sm:$0xff]  ;;  %v232_v7 = vld [vmem:[%s228_s12 + $0x8] sm:$0x1]  ;;  %398 = vmatpush.bf16.msra.mxu2 %v687_v5  ;;  %s454_s5 = sshll.u32 %s451_s28, 4  ;;  %s432_s6 = scalar_lea.sflag [#allocation4], %s1014_s13  ;;  %s455_s5 = int_to_ptr.hbm [resolvable:$true] %s454_s5 }
  0x20   : > { %v255_v8 = vunpack.c.l.b16 %v232_v7  ;;  %v260_v11 = vshrl.u32 %v676_v6, 16  ;;  %v262_v12 = vshll.u32 %v676_v6, 16  ;;  %v363_v22 = vrot.slane %v676_v6, 1  ;;  %s804_s7 = sshra.s32 %s455_s5, 4  ;;  %s810_s11 = scalar_lea.hbm %s1102_s2, 16  ;;  %s805_s7 = int_to_ptr.hbm [resolvable:$true] %s804_s7 }
  0x21   : > { %305 = vmatpush.bf16.msra.mxu0 %v682_v9  ;;  %s806_s8 = scalar_lea.hbm %s805_s7, 8  ;;  %p811_p3 = scmp.lt.s32.totalorder %s805_s7, %s1102_s2 }
  0x22   : > { %v257_v14 = vpack.c.b16 %v255_v8, %v255_v8  ;;  %v264_v15 = vrot.slane %v262_v12, 1  ;;  %345 = vmatpush.bf16.msra.mxu1 %v678_v10  ;;  %p807_p0 = scmp.ne.s32.totalorder %s805_s7, %s806_s8  ;;  %p812_p4 = scmp.lt.s32.totalorder %s810_s11, %s806_s8 }
  0x23   : > { %399 = vmatpush.bf16.msra.mxu2 %v686_v13 }
  0x24   : > { %v267_v16 = vshll.u32 %v257_v14, 16  ;;  %v265_v19 = vor.u32 %v264_v15, %v260_v11  ;;  %v364_v23 = vrot.slane %v257_v14, 1  ;;  %p808_p1 = pnand %p807_p0, %p988_p5  ;;  %p813_p7 = por %p812_p4, %p811_p3 }
  0x25   : > { %306 = vmatpush.bf16.msra.mxu0 %v681_v17 }
  0x26   : > { %v269_v21 = vrot.slane %v267_v16, 1  ;;  %346 = vmatpush.bf16.msra.mxu1 %v677_v18  ;;  %v365_v25 = vsel %vm362_vm1, %v363_v22, %v364_v23  ;;  %p809_p2 = pneg %p808_p1 }
  0x27   : > { %400 = vmatpush.bf16.msra.mxu2 %v685_v20 }
  0x28   : > { %v270_v24 = vsel %vm258_vm0, %v265_v19, %v269_v21  ;;  %p814_p8 = pnand %p813_p7, %p809_p2 }
  0x29   : > { %636 = vmatmul.msk.bf16.vlgmr.msra.gmra.mxu0 %vm295_vm2, %v270_v24  ;;  %653 = vmatmul.msk.bf16.vlgmr.msra.gmra.mxu1 %vm295_vm2, %v676_v6 }
  0x2a   : > { %670 = vmatmul.msk.bf16.vlgmr.msra.gmra.mxu2 %vm295_vm2, %v365_v25 }
  0xa6   : > { %v308_v26 = vpop.f32.mrf.mxu0  ;;  %v348_v27 = vpop.f32.mrf.mxu1 }
  0xa7   : > { %v349_v29 = vadd.f32 %v348_v27, %v308_v26 }
  0xad   : > { %v402_v28 = vpop.f32.mrf.mxu2 }
  0xae   : > { %v310_v30 = vpop.f32.mrf.mxu0  ;;  %v350_v31 = vpop.f32.mrf.mxu1  ;;  %v407_v32 = vadd.f32 %v402_v28, %v349_v29 }
  0xaf   : > { %v351_v33 = vadd.f32 %v350_v31, %v310_v30 }
  0xb0   : > { %v421_v36 = vmul.f32 %v407_v32, %v407_v32 }
  0xb5   : > { %v404_v34 = vpop.f32.mrf.mxu2 }
  0xb6   : > { %v408_v35 = vadd.f32 %v404_v34, %v351_v33 }
  0xb8   : > { %v693_v37 = vpack.c.bf16 %v408_v35, %v407_v32  ;;  %v413_v38 = vadd.f32 %v408_v35, %v407_v32  ;;  %v422_v39 = vmul.f32 %v408_v35, %v408_v35 }
  0xba   : > { %694 = vst [vmem:[%s211_s29] sm:$0xff] %v693_v37   ;;  %v414_v40 = vrot.slane %v413_v38, 4  ;;  %v423_v41 = vadd.f32 %v422_v39, %v421_v36 }
  0xbb   : > { %817 = shalt.err (!%p814_p8)
}
  0xbc   : > { %s921_s22 = smov 64   ;;  %s922_s23 = smov 4   ;;  %v415_v42 = vadd.f32 %v414_v40, %v413_v38  ;;  %v424_v43 = vrot.slane %v423_v41, 4 }
  0xbd   : > { %700 = dma.vmem_to_hbm [thread:$0]  (%p988_p5), %s453_s30, 128, %s455_s5, %s432_s6, %s921_s22, %s921_s22, %s922_s23  }
  0xbe   : > { %v416_v44 = vrot.slane %v415_v42, 2  ;;  %v425_v45 = vadd.f32 %v424_v43, %v423_v41  ;;  %s466_s29 = scalar_lea.hbm %s1103_s3, %s969_s19  ;;  %s436_s7 = sand.u32 1, %s969_s19  }
  0xbf   : > { %s479_s10 = scalar_lea.hbm %s1104_s4, %s969_s19  ;;  %s217_s11 = scalar_lea.vmem [#allocation6], %s1014_s13 }
  0xc0   : > { %v417_v46 = vadd.f32 %v416_v44, %v415_v42  ;;  %v426_v47 = vrot.slane %v425_v45, 2  ;;  %s1042_s12 = sshll.u32 %s217_s11, 4  ;;  %s1044_s30 = sshll.u32 %s466_s29, 4  ;;  %s469_s12 = int_to_ptr.vmem [resolvable:$true] %s1042_s12  ;;  %s471_s30 = int_to_ptr.hbm [resolvable:$true] %s1044_s30 }
  0xc1   : > { %s223_s5 = scalar_lea.vmem [#allocation8], %s1014_s13  ;;  %s1049_s14 = sshll.u32 %s479_s10, 4  ;;  %s484_s14 = int_to_ptr.hbm [resolvable:$true] %s1049_s14 }
  0xc2   : > { %v418_v48 = vrot.slane %v417_v46, 1  ;;  %v427_v49 = vadd.f32 %v426_v47, %v425_v45  ;;  %s1047_s6 = sshll.u32 %s223_s5, 4  ;;  %s437_s19 = scalar_lea.sflag [#allocation7], %s436_s7  ;;  %s482_s6 = int_to_ptr.vmem [resolvable:$true] %s1047_s6 }
  0xc3   : > { %s832_s22 = sshra.s32 %s471_s30, 4  ;;  %s838_s28 = scalar_lea.hbm %s1103_s3, 2  ;;  %s833_s22 = int_to_ptr.hbm [resolvable:$true] %s832_s22 }
  0xc4   : > { %v428_v50 = vrot.slane %v427_v49, 1  ;;  %v419_v51 = vadd.f32 %v418_v48, %v417_v46  ;;  %s834_s23 = scalar_lea.hbm %s833_s22, 1  ;;  %p839_p12 = scmp.lt.s32.totalorder %s833_s22, %s1103_s3 }
  0xc5   : > { %p835_p9 = scmp.ne.s32.totalorder %s833_s22, %s834_s23  ;;  %p840_p13 = scmp.lt.s32.totalorder %s838_s28, %s834_s23 }
  0xc6   : > { %420 = vst [vmem:[%s217_s11] sm:$0x1] %v419_v51  ;;  %v429_v52 = vadd.f32 %v428_v50, %v427_v49 }
  0xc7   : > { %p836_p10 = pnand %p835_p9, %p988_p5  ;;  %p841_p0 = por %p840_p13, %p839_p12 }
  0xc9   : > { %p837_p11 = pneg %p836_p10 }
  0xcb   : > { %p842_p1 = pnand %p841_p0, %p837_p11 }
  0xcd   : > { %845 = shalt.err (!%p842_p1)
}
  0xce   : > { %701 = dma.vmem_to_hbm [thread:$0]  (%p988_p5), %s469_s12, 16, %s471_s30, %s437_s19   ;;  %430 = vst [vmem:[%s223_s5] sm:$0x1] %v429_v52 }
  0xcf   : > { %s860_s7 = sshra.s32 %s484_s14, 4  ;;  %s866_s22 = scalar_lea.hbm %s1104_s4, 2  ;;  %s861_s7 = int_to_ptr.hbm [resolvable:$true] %s860_s7 }
  0xd0   : > { %s862_s9 = scalar_lea.hbm %s861_s7, 1  ;;  %p867_p7 = scmp.lt.s32.totalorder %s861_s7, %s1104_s4 }
  0xd1   : > { %p863_p2 = scmp.ne.s32.totalorder %s861_s7, %s862_s9  ;;  %p868_p8 = scmp.lt.s32.totalorder %s866_s22, %s862_s9 }
  0xd3   : > { %p864_p3 = pnand %p863_p2, %p988_p5  ;;  %p869_p9 = por %p868_p8, %p867_p7 }
  0xd5   : > { %p865_p4 = pneg %p864_p3 }
  0xd7   : > { %p870_p10 = pnand %p869_p9, %p865_p4 }
  0xd9   : > { %873 = shalt.err (!%p870_p10)
}
  0xda   : > { %702 = dma.vmem_to_hbm [thread:$0]  (%p988_p5), %s482_s6, 16, %s484_s14, %s437_s19  }
  0xdb PF: > { %p722_p11 = scmp.ge.s32.totalorder %s916_s18, 2  ;;  %s495_s12 = sand.u32 1, %s904_s15  }
  0xdc   : > { %s496_s30 = scalar_lea.sflag [#allocation4], %s495_s12 }
  0xdd   : > { %p711_p12 = pnand %p722_p11, %p992_p6 }
  0xdf   : > { %p712_p13 = pneg %p711_p12 }
  0xe1   : > { %895 = dma.done.wait (%p712_p13), %s496_s30, 128  }
  0xe2   : > { %897 = vsyncadd (%p712_p13), %s496_s30, 4294967168  ;;  %s505_s25 = sand.u32 1, %s608_s20  }
  0xe3   : > { %s506_s5 = scalar_lea.sflag [#allocation7], %s505_s25 }
  0xe4   : > { %899 = dma.done.wait (%p712_p13), %s506_s5, 32  }
  0xe5   : > { %901 = vsyncadd (%p712_p13), %s506_s5, 4294967264  ;;  %p19_p5 = scmp.ge.s32.totalorder %s973_s21, 4   ;;  %s1107_s15 = smov %s908_s16 }
  0xe6   : > { %s1108_s16 = smov %s912_s17  ;;  %s1109_s17 = smov %s986_s24 }
  0xe7   : > { %s1110_s18 = smov %s973_s21  ;;  %21 = sbr.rel (!%p19_p5) target bundleno = 6 (0x6), region = 102 }
  0xec   :  { %520 = vsyncpa [#allocation3], 1 }
  0xed   :  { %522 = vsyncpa [#allocation3 + $0x1], 1 }
  0xee   :  { %523 = vsyncpa [#allocation4], 1 }
  0xef   :  { %525 = vsyncpa [#allocation4 + $0x1], 1 }
  0xf0   :  { %526 = vsyncpa [#allocation7], 1 }
  0xf1   :  { %528 = vsyncpa [#allocation7 + $0x1], 1 }

</bundles_post_ra>
